<compile_context>
chip_gen: v5e
topology: v5e:2x2
jax: 0.10.0
libtpu: 0.0.40
codegen_flags: <defaults>
</compile_context>

<pallas_src>
import math

import jax
import jax.numpy as jnp
from jax.experimental import pallas as pl
from jax.experimental.pallas import tpu as pltpu


LANES = 128
ROW_SUB = 8  # f32 sublane granularity


def _device_kind():
    try:
        return jax.devices()[0].device_kind.lower()
    except Exception:
        return ""


_KIND = _device_kind()
_IS_V7X = "v7" in _KIND
# v7x has 2 TensorCores/chip; v5e/v6e have 1 (a leading "core" axis there is just a
# serial loop with extra epilogues, so drop it).
_N_CORES = 2 if _IS_V7X else 1
# Bigger tiles on v7x to amortize per-step overhead against its ~3.2 TB/s HBM.
_MAX_TILE_ROWS = 4096 if _IS_V7X else 2048
_VMEM_LIMIT_BYTES = 32 * 1024 * 1024


def _sublane_align(*dtypes):
    """Row alignment so every streamed dtype gets unmasked, fully-packed tiles."""
    align = ROW_SUB
    for dt in dtypes:
        itemsize = jnp.dtype(dt).itemsize
        align = max(align, ROW_SUB * max(1, 4 // itemsize))
    return align


def _plan_tiling(rows, align, n_cores, max_tile_rows):
    """Pick (tile_rows, steps_per_core, padded_rows).

    The tile only shrinks below max_tile_rows when the whole per-core extent is
    smaller; awkward row counts are padded up instead of falling off the small-tile
    bandwidth cliff.
    """
    rows_per_core = pl.cdiv(rows, n_cores)
    tr = min(max_tile_rows, pl.cdiv(rows_per_core, align) * align)
    steps = pl.cdiv(rows_per_core, tr)
    return tr, steps, n_cores * steps * tr


def _morph_tick_kernel(alpha_ref, base_ref, deform_ref, target_ref,
                       morphed_ref, loss_ref, acc_ref):
    """One grid step: morph a (TR, 128) tile and accumulate squared error per core."""
    step = pl.program_id(1)

    @pl.when(step == 0)
    def _():
        acc_ref[...] = jnp.zeros_like(acc_ref)

    alpha = alpha_ref[0]  # scalar morph factor, resident in SMEM
    morphed = base_ref[...] + alpha * deform_ref[...]
    morphed_ref[...] = morphed.astype(morphed_ref.dtype)

    diff = morphed - target_ref[...].astype(jnp.float32)
    dsq = diff * diff
    # Fold (TR,128) -> (ACC_ROWS,128) with pure elementwise vreg adds (VPU slot);
    # ACC_ROWS independent partial rows keep the add chain short. The cross-lane
    # reduce of the tiny accumulator happens in XLA after the kernel.
    acc_rows = acc_ref.shape[0]
    acc_ref[...] += jnp.sum(dsq.reshape(-1, acc_rows, LANES), axis=0)

    @pl.when(step == pl.num_programs(1) - 1)
    def _():
        # Full-vreg, unmasked store of the raw per-core accumulator.
        loss_ref[...] = acc_ref[...]


def _morph_tick_pallas(alpha, base2d, deform2d, target2d):
    R, C = base2d.shape
    assert C == LANES

    align = _sublane_align(base2d.dtype, deform2d.dtype, target2d.dtype)
    n_cores = _N_CORES
    tr, steps, r_pad = _plan_tiling(R, align, n_cores, _MAX_TILE_ROWS)

    if r_pad != R:
        pad = ((0, r_pad - R), (0, 0))
        # Padded rows are zero in base/deform/target -> zero morph, zero sq-error.
        base2d = jnp.pad(base2d, pad)
        deform2d = jnp.pad(deform2d, pad)
        target2d = jnp.pad(target2d, pad)

    # Independent accumulator rows; must divide the tile row count.
    acc_rows = 32 if tr % 32 == 0 else (16 if tr % 16 == 0 else ROW_SUB)

    tile_spec = pl.BlockSpec((tr, LANES), lambda c, i: (c * steps + i, 0))

    if n_cores == 2:
        lead_sem = getattr(pltpu, "CORE_PARALLEL", "parallel")
        dim_sems = (lead_sem, "arbitrary")
    else:
        dim_sems = ("arbitrary", "arbitrary")

    morphed, loss_partials = pl.pallas_call(
        _morph_tick_kernel,
        out_shape=(
            jax.ShapeDtypeStruct((r_pad, LANES), jnp.float32),
            jax.ShapeDtypeStruct((n_cores * acc_rows, LANES), jnp.float32),
        ),
        grid_spec=pltpu.PrefetchScalarGridSpec(
            num_scalar_prefetch=0,
            grid=(n_cores, steps),
            in_specs=[
                pl.BlockSpec(memory_space=pltpu.SMEM),  # alpha scalar in SMEM
                tile_spec,                              # base
                tile_spec,                              # deform
                tile_spec,                              # target (native dtype)
            ],
            out_specs=[
                tile_spec,                                             # morphed
                pl.BlockSpec((acc_rows, LANES), lambda c, i: (c, 0)),  # loss partials
            ],
            scratch_shapes=[pltpu.VMEM((acc_rows, LANES), jnp.float32)],
        ),
        compiler_params=pltpu.CompilerParams(
            dimension_semantics=dim_sems,
            vmem_limit_bytes=_VMEM_LIMIT_BYTES,
        ),
    )(alpha, base2d, deform2d, target2d)

    return morphed[:R], loss_partials


class MorphGeometry:
    """Minimal deterministic stand-in for the external `geometry` object."""

    def __init__(self, shape, key):
        kb, kd = jax.random.split(key)
        # "parameters" of the geometry: a base field and a learnable deformation field.
        self.base = jax.random.normal(kb, shape, dtype=jnp.float32)
        self.deform = 0.1 * jax.random.normal(kd, shape, dtype=jnp.float32)
        self.shape = shape

    def parameters(self):
        return [self.base, self.deform]

    def tick(self, target, it, FLAGS):
        assert target.shape == self.shape
        n = math.prod(self.shape)

        alpha_val = jnp.minimum(jnp.float32(it) / jnp.float32(FLAGS["iter"]), 1.0)
        alpha = jnp.reshape(alpha_val, (1,)).astype(jnp.float32)

        rows = pl.cdiv(n, LANES)
        pad_elems = rows * LANES - n

        def to2d(x):
            flat = x.reshape(-1)
            if pad_elems:
                flat = jnp.pad(flat, (0, pad_elems))
            return flat.reshape(rows, LANES)

        base2d = to2d(self.base)
        deform2d = to2d(self.deform)
        target2d = to2d(target)  # streamed at native dtype, cast in-register

        morphed2d, loss_partials = _morph_tick_pallas(alpha, base2d, deform2d, target2d)

        loss = jnp.sum(loss_partials) / jnp.float32(n)
        morphed = morphed2d.reshape(-1)[:n].reshape(self.shape)
        return morphed, loss


class Trainer:
    """JAX/Pallas port of the PyTorch Trainer wrapper."""

    def __init__(self, geometry, FLAGS):
        self.geometry = geometry
        self.FLAGS = FLAGS
        self.geo_params = list(self.geometry.parameters())

    def forward(self, target, it):
        return self.geometry.tick(target, it, self.FLAGS)

    __call__ = forward


if __name__ == "__main__":
    key = jax.random.PRNGKey(0)
    k_geo, k_tgt = jax.random.split(key)

    # small NCHW-like shape consistent with the module's image-target usage
    B, C, H, W = 2, 4, 16, 16
    shape = (B, C, H, W)

    FLAGS = {"iter": 100}
    geometry = MorphGeometry(shape, k_geo)
    trainer = Trainer(geometry, FLAGS)

    target = jax.random.normal(k_tgt, shape, dtype=jnp.float32)
    it = 25

    morphed, loss = trainer(target, it)
    jax.block_until_ready((morphed, loss))

    # reference check in plain JAX
    alpha = min(it / FLAGS["iter"], 1.0)
    ref_morphed = geometry.base + alpha * geometry.deform
    ref_loss = jnp.mean((ref_morphed - target.astype(jnp.float32)) ** 2)
    assert jnp.allclose(morphed, ref_morphed, atol=1e-5), "morphed mismatch"
    assert jnp.allclose(loss, ref_loss, atol=1e-5), "loss mismatch"

    print("KERNEL_OK")
</pallas_src>

<mosaic_0001>
module attributes {stable_mosaic.version = 11 : i64} {
  func.func @_morph_tick_kernel(%arg0: i32, %arg1: i32, %arg2: memref<1xf32, #tpu.memory_space<smem>>, %arg3: memref<16x128xf32, #tpu.memory_space<vmem>>, %arg4: memref<16x128xf32, #tpu.memory_space<vmem>>, %arg5: memref<16x128xf32, #tpu.memory_space<vmem>>, %arg6: memref<16x128xf32, #tpu.memory_space<vmem>>, %arg7: memref<16x128xf32, #tpu.memory_space<vmem>>, %arg8: memref<16x128xf32, #tpu.memory_space<vmem>>) attributes {dimension_semantics = [#tpu.dimension_semantics<arbitrary>, #tpu.dimension_semantics<arbitrary>], iteration_bounds = array<i64: 1, 1>, scalar_prefetch = 0 : i64, scratch_operands = 1 : i64, tpu.core_type = #tpu.core_type<tc>, window_params = [{transform_indices = @transform_0, window_bounds = array<i64: 1>}, {transform_indices = @transform_1, window_bounds = array<i64: 16, 128>}, {transform_indices = @transform_2, window_bounds = array<i64: 16, 128>}, {transform_indices = @transform_3, window_bounds = array<i64: 16, 128>}, {transform_indices = @transform_4, window_bounds = array<i64: 16, 128>}, {transform_indices = @transform_5, window_bounds = array<i64: 16, 128>}]} {
    %c0_i32 = arith.constant 0 : i32
    %0 = arith.cmpi eq, %arg1, %c0_i32 : i32
    %1 = arith.extui %0 : i1 to i32
    %c0_i32_0 = arith.constant 0 : i32
    %2 = arith.cmpi ne, %1, %c0_i32_0 : i32
    scf.if %2 {
      %cst_15 = arith.constant 0.000000e+00 : f32
      %21 = vector.broadcast %cst_15 : f32 to vector<16x128xf32>
      %c0_16 = arith.constant 0 : index
      %c0_17 = arith.constant 0 : index
      %22 = vector.load %arg8[%c0_16, %c0_17] : memref<16x128xf32, #tpu.memory_space<vmem>>, vector<16x128xf32>
      tpu.vector_store %arg8[%c0_16, %c0_17], %21 {strides = array<i32>} : memref<16x128xf32, #tpu.memory_space<vmem>>, vector<16x128xf32>,
    } else {
    }
    %c0 = arith.constant 0 : index
    %3 = memref.load %arg2[%c0] : memref<1xf32, #tpu.memory_space<smem>>
    %c0_1 = arith.constant 0 : index
    %c0_2 = arith.constant 0 : index
    %4 = vector.load %arg3[%c0_1, %c0_2] : memref<16x128xf32, #tpu.memory_space<vmem>>, vector<16x128xf32>
    %c0_3 = arith.constant 0 : index
    %c0_4 = arith.constant 0 : index
    %5 = vector.load %arg4[%c0_3, %c0_4] : memref<16x128xf32, #tpu.memory_space<vmem>>, vector<16x128xf32>
    %6 = vector.broadcast %3 : f32 to vector<16x128xf32>
    %7 = arith.mulf %6, %5 : vector<16x128xf32>
    %8 = arith.addf %4, %7 : vector<16x128xf32>
    %c0_5 = arith.constant 0 : index
    %c0_6 = arith.constant 0 : index
    %9 = vector.load %arg6[%c0_5, %c0_6] : memref<16x128xf32, #tpu.memory_space<vmem>>, vector<16x128xf32>
    tpu.vector_store %arg6[%c0_5, %c0_6], %8 {strides = array<i32>} : memref<16x128xf32, #tpu.memory_space<vmem>>, vector<16x128xf32>,
    %c0_7 = arith.constant 0 : index
    %c0_8 = arith.constant 0 : index
    %10 = vector.load %arg5[%c0_7, %c0_8] : memref<16x128xf32, #tpu.memory_space<vmem>>, vector<16x128xf32>
    %11 = arith.subf %8, %10 : vector<16x128xf32>
    %12 = arith.mulf %11, %11 : vector<16x128xf32>
    %c0_9 = arith.constant 0 : index
    %c0_10 = arith.constant 0 : index
    %13 = vector.load %arg8[%c0_9, %c0_10] : memref<16x128xf32, #tpu.memory_space<vmem>>, vector<16x128xf32>
    %14 = vector.shape_cast %12 : vector<16x128xf32> to vector<1x16x128xf32>
    %cst = arith.constant dense<0.000000e+00> : vector<16x128xf32>
    %15 = vector.multi_reduction <add>, %14, %cst [0] : vector<1x16x128xf32> to vector<16x128xf32>
    %16 = arith.addf %13, %15 : vector<16x128xf32>
    %c0_11 = arith.constant 0 : index
    %c0_12 = arith.constant 0 : index
    %17 = vector.load %arg8[%c0_11, %c0_12] : memref<16x128xf32, #tpu.memory_space<vmem>>, vector<16x128xf32>
    tpu.vector_store %arg8[%c0_11, %c0_12], %16 {strides = array<i32>} : memref<16x128xf32, #tpu.memory_space<vmem>>, vector<16x128xf32>,
    %c0_i32_13 = arith.constant 0 : i32
    %18 = arith.cmpi eq, %arg1, %c0_i32_13 : i32
    %19 = arith.extui %18 : i1 to i32
    %c0_i32_14 = arith.constant 0 : i32
    %20 = arith.cmpi ne, %19, %c0_i32_14 : i32
    scf.if %20 {
      %c0_15 = arith.constant 0 : index
      %c0_16 = arith.constant 0 : index
      %21 = vector.load %arg8[%c0_15, %c0_16] : memref<16x128xf32, #tpu.memory_space<vmem>>, vector<16x128xf32>
      %c0_17 = arith.constant 0 : index
      %c0_18 = arith.constant 0 : index
      %22 = vector.load %arg7[%c0_17, %c0_18] : memref<16x128xf32, #tpu.memory_space<vmem>>, vector<16x128xf32>
      tpu.vector_store %arg7[%c0_17, %c0_18], %21 {strides = array<i32>} : memref<16x128xf32, #tpu.memory_space<vmem>>, vector<16x128xf32>,
    } else {
    }
    return
  }
  func.func @transform_0(%arg0: i32, %arg1: i32) -> i32 {
    %c0_i32 = arith.constant 0 : i32
    %c0_i32_0 = arith.constant 0 : i32
    return %c0_i32 : i32
  }
  func.func @transform_1(%arg0: i32, %arg1: i32) -> (i32, i32) {
    %c1_i32 = arith.constant 1 : i32
    %0 = arith.muli %arg0, %c1_i32 : i32
    %1 = arith.addi %0, %arg1 : i32
    %c0_i32 = arith.constant 0 : i32
    %c0_i32_0 = arith.constant 0 : i32
    return %1, %c0_i32 : i32, i32
  }
  func.func @transform_2(%arg0: i32, %arg1: i32) -> (i32, i32) {
    %c1_i32 = arith.constant 1 : i32
    %0 = arith.muli %arg0, %c1_i32 : i32
    %1 = arith.addi %0, %arg1 : i32
    %c0_i32 = arith.constant 0 : i32
    %c0_i32_0 = arith.constant 0 : i32
    return %1, %c0_i32 : i32, i32
  }
  func.func @transform_3(%arg0: i32, %arg1: i32) -> (i32, i32) {
    %c1_i32 = arith.constant 1 : i32
    %0 = arith.muli %arg0, %c1_i32 : i32
    %1 = arith.addi %0, %arg1 : i32
    %c0_i32 = arith.constant 0 : i32
    %c0_i32_0 = arith.constant 0 : i32
    return %1, %c0_i32 : i32, i32
  }
  func.func @transform_4(%arg0: i32, %arg1: i32) -> (i32, i32) {
    %c1_i32 = arith.constant 1 : i32
    %0 = arith.muli %arg0, %c1_i32 : i32
    %1 = arith.addi %0, %arg1 : i32
    %c0_i32 = arith.constant 0 : i32
    %c0_i32_0 = arith.constant 0 : i32
    return %1, %c0_i32 : i32, i32
  }
  func.func @transform_5(%arg0: i32, %arg1: i32) -> (i32, i32) {
    %c0_i32 = arith.constant 0 : i32
    %c0_i32_0 = arith.constant 0 : i32
    return %arg0, %c0_i32 : i32, i32
  }
}

</mosaic_0001>

<bundles_post_ra>
// kernel: tpu_custom_call.1
= control target key start
LH: loop header
LB: loop body
LE: loop exit
PB: predicated region body
PF: predicated region fallthrough
CT: control target
= control target key end

     0   :  { %12 = vsyncpa [#allocation5], 0  ;;  %s375_s0 = inlined_call_operand.<no memory space> [shape: f32[1], index: 0, kind: input, shape index: {}]   ;;  %s376_s1 = inlined_call_operand.hbm [shape: f32[16,128], index: 1, kind: input, shape index: {}]   ;;  %s377_s2 = inlined_call_operand.hbm [shape: f32[16,128], index: 2, kind: input, shape index: {}]   ;;  %s378_s3 = inlined_call_operand.hbm [shape: f32[16,128], index: 3, kind: input, shape index: {}]   ;;  %s379_s4 = inlined_call_operand.hbm [shape: f32[16,128], index: 4, kind: output, shape index: {0}]   ;;  %s380_s5 = inlined_call_operand.hbm [shape: f32[16,128], index: 5, kind: output, shape index: {1}]  }
   0x1   :  { %13 = vsyncpa [#allocation8], 0 }
   0x2   :  { %14 = vsyncpa [#allocation6], 0 }
   0x3   :  { %15 = vsyncpa [#allocation12], 0  ;;  %s43_s20 = sshll.u32 %s377_s2, 4  ;;  %s305_s21 = smov [#allocation7]   ;;  %s44_s20 = int_to_ptr.hbm [resolvable:$true] %s43_s20 }
   0x4   :  { %s45_s22 = sshll.u32 %s305_s21, 4  ;;  %s26_s25 = sshll.u32 %s376_s1, 4  ;;  %s46_s22 = int_to_ptr.vmem [resolvable:$true] %s45_s22  ;;  %s27_s25 = int_to_ptr.hbm [resolvable:$true] %s26_s25 }
   0x5   :  { %s306_s26 = smov 128   ;;  %s307_s27 = smov 8  }
   0x6   :  { %51 = dma.hbm_to_vmem [thread:$0]  %s44_s20, 256, %s46_s22, [#allocation8], %s306_s26, %s306_s26, %s307_s27  }
   0x7   :  { %s308_s28 = smov [#allocation4]   ;;  %s60_s2 = sshll.u32 %s378_s3, 4  ;;  %s61_s2 = int_to_ptr.hbm [resolvable:$true] %s60_s2 }
   0x8   :  { %s28_s29 = sshll.u32 %s308_s28, 4  ;;  %s309_s1 = smov [#allocation9]   ;;  %s29_s29 = int_to_ptr.vmem [resolvable:$true] %s28_s29 }
   0x9   :  { %34 = dma.hbm_to_vmem [thread:$0]  %s27_s25, 256, %s29_s29, [#allocation5], %s306_s26, %s306_s26, %s307_s27  }
   0xa   :  { %s62_s7 = sshll.u32 %s309_s1, 4  ;;  %s63_s7 = int_to_ptr.vmem [resolvable:$true] %s62_s7 }
   0xb   :  { %68 = dma.hbm_to_vmem [thread:$0]  %s61_s2, 256, %s63_s7, [#allocation8], %s306_s26, %s306_s26, %s307_s27  }
   0xc   :  { %297 = dma.done.wait [#allocation5], 256  }
   0xd   :  { %298 = vsyncadd [#allocation5], 4294967040 }
   0xe   :  { %299 = dma.done.wait [#allocation8], 512  }
   0xf   :  { %300 = vsyncadd [#allocation8], 4294966784  ;;  %v100_v0 = vstv %s375_s0  ;;  %v96_v1 = vld [vmem:[#allocation4] sm:$0xff]  ;;  %v98_v2 = vld [vmem:[#allocation7] sm:$0xff]  ;;  %s310_s3 = smov [#allocation10]   ;;  %s138_s13 = sshll.u32 %s379_s4, 4  ;;  %s139_s13 = int_to_ptr.hbm [resolvable:$true] %s138_s13 }
  0x10   :  { %v101_v3 = vmul.f32 %v100_v0, %v98_v2  ;;  %v97_v4 = vld [vmem:[#allocation4 + $0x8] sm:$0xff]  ;;  %v99_v5 = vld [vmem:[#allocation7 + $0x8] sm:$0xff]  ;;  %s136_s10 = sshll.u32 %s310_s3, 4  ;;  %v107_v7 = vld [vmem:[#allocation9] sm:$0xff]  ;;  %s311_s0 = smov [#allocation11]   ;;  %s137_s10 = int_to_ptr.vmem [resolvable:$true] %s136_s10 }
  0x11   :  { %v102_v6 = vmul.f32 %v100_v0, %v99_v5  ;;  %v108_v9 = vld [vmem:[#allocation9 + $0x8] sm:$0xff]  ;;  %s149_s14 = sshll.u32 %s311_s0, 4  ;;  %s151_s17 = sshll.u32 %s380_s5, 4  ;;  %s150_s14 = int_to_ptr.vmem [resolvable:$true] %s149_s14  ;;  %s152_s17 = int_to_ptr.hbm [resolvable:$true] %s151_s17 }
  0x12   :  { %v103_v8 = vadd.f32 %v101_v3, %v96_v1 }
  0x13   :  { %v104_v10 = vadd.f32 %v102_v6, %v97_v4 }
  0x14   :  { %105 = vst [vmem:[#allocation10] sm:$0xff] %v103_v8  ;;  %v109_v11 = vsub.f32 %v103_v8, %v107_v7 }
  0x15   :  { %106 = vst [vmem:[#allocation10 + $0x8] sm:$0xff] %v104_v10  ;;  %v110_v12 = vsub.f32 %v104_v10, %v108_v9 }
  0x16   :  { %v111_v13 = vmul.f32 %v109_v11, %v109_v11  ;;  %144 = dma.vmem_to_hbm [thread:$0]  %s137_s10, 256, %s139_s13, [#allocation6], %s306_s26, %s306_s26, %s307_s27  }
  0x17   :  { %v112_v14 = vmul.f32 %v110_v12, %v110_v12 }
  0x18   :  { %126 = vst [vmem:[#allocation11] sm:$0xff] %v111_v13 }
  0x19   :  { %127 = vst [vmem:[#allocation11 + $0x8] sm:$0xff] %v112_v14 }
  0x1a   :  { %157 = dma.vmem_to_hbm [thread:$0]  %s150_s14, 256, %s152_s17, [#allocation12], %s306_s26, %s306_s26, %s307_s27  }
  0x1b   :  { %301 = dma.done.wait [#allocation6], 256  }
  0x1c   :  { %302 = vsyncadd [#allocation6], 4294967040 }
  0x1d   :  { %303 = dma.done.wait [#allocation12], 256  }
  0x1e   :  { %304 = vsyncadd [#allocation12], 4294967040 }
  0x1f   :  { %166 = vsyncpa [#allocation5], 1 }
  0x20   :  { %167 = vsyncpa [#allocation8], 1 }
  0x21   :  { %168 = vsyncpa [#allocation6], 1 }
  0x22   :  { %169 = vsyncpa [#allocation12], 1 }

</bundles_post_ra>
